<compile_context>
chip_gen: v5e
topology: v5e:2x2
jax: 0.10.0
libtpu: 0.0.40
codegen_flags: <defaults>
</compile_context>

<pallas_src>
import functools

import jax
import jax.numpy as jnp
from jax.experimental import pallas as pl
from jax.experimental.pallas import tpu as pltpu


def _round_up(x, m):
    return ((x + m - 1) // m) * m


def _gnn_kernel(x_ref, w_ref, b_ref, o_ref, *, compute_dtype):
    # Cast the streamed x tile in-register (x stays f32 in HBM -> 4 B/elt of
    # traffic instead of a separate wrapper pad/cast pass).
    x = x_ref[...].astype(compute_dtype)
    h = jnp.dot(x, w_ref[...], preferred_element_type=jnp.float32)  # MXU, f32 acc
    h = h + b_ref[...]                                              # VPU, f32
    o_ref[...] = jnp.maximum(h, 0.0).astype(o_ref.dtype)


def prepare_gnn_params(weight, bias, *, compute_dtype=jnp.bfloat16):
    """One-time per-parameter-set prep (hoisted out of the per-call path).

    weight: [out_dim, in_dim] (PyTorch nn.Linear layout) -> [in_dim, n] cast to
    compute_dtype; the out dim is zero-padded to a multiple of 128 only when
    needed so the kernel's output store is lane-dense.
    """
    out_dim, in_dim = weight.shape
    n_pad = out_dim if out_dim % 128 == 0 else _round_up(out_dim, 128)
    w = weight.T.astype(compute_dtype)
    b = bias.astype(jnp.float32).reshape(1, out_dim)
    if n_pad != out_dim:
        w = jnp.zeros((in_dim, n_pad), compute_dtype).at[:, :out_dim].set(w)
        b = jnp.zeros((1, n_pad), jnp.float32).at[:, :out_dim].set(b)
    return w, b


def gnn_layer_apply(adj_x, w, b, out_dim=None, *, out_dtype=None,
                    compute_dtype=jnp.bfloat16, tile_m_max=1024):
    """relu(adj_x @ w + b) with w/b already prepared by prepare_gnn_params.

    adj_x: [M, in_dim] float32 (unpadded, streamed as-is from HBM)
    w:     [in_dim, n_pad] compute_dtype
    b:     [1, n_pad] float32
    returns [M, out_dim] in out_dtype (default: adj_x.dtype)
    """
    M, in_dim = adj_x.shape
    k_w, n_pad = w.shape
    assert k_w == in_dim, (k_w, in_dim)
    out_dim = n_pad if out_dim is None else out_dim
    out_dtype = adj_x.dtype if out_dtype is None else out_dtype

    # --- Balanced M tiles; >= 2 tiles when M >= 16 so the "parallel" axis can
    # span both TensorCores on v7x. M is never padded: Pallas handles the
    # partial last tile (invalid rows discarded on store).
    min_tiles = 2 if M >= 16 else 1
    n_tiles = max(min_tiles, pl.cdiv(M, tile_m_max))
    tm = min(_round_up(pl.cdiv(M, n_tiles), 8), M)
    grid_m = pl.cdiv(M, tm)

    # --- Block specs: x streamed over M, W/bias resident (constant index_map).
    x_spec = pl.BlockSpec((tm, in_dim), lambda i: (i, 0))
    cdt_bytes = jnp.dtype(compute_dtype).itemsize
    w_bytes = in_dim * n_pad * cdt_bytes
    if w_bytes > (8 << 20):
        # Large resident weight: single-buffer it (never re-fetched) so the
        # plan stays inside v7x's 64 MiB VMEM.
        w_spec = pl.BlockSpec((in_dim, n_pad), lambda i: (0, 0),
                              pipeline_mode=pl.Buffered(1))
        b_spec = pl.BlockSpec((1, n_pad), lambda i: (0, 0),
                              pipeline_mode=pl.Buffered(1))
        w_bufs = 1
    else:
        w_spec = pl.BlockSpec((in_dim, n_pad), lambda i: (0, 0))
        b_spec = pl.BlockSpec((1, n_pad), lambda i: (0, 0))
        w_bufs = 2
    o_spec = pl.BlockSpec((tm, n_pad), lambda i: (i, 0))

    # --- VMEM budget from the exact tile plan, capped by detected capacity
    # (~96 MiB on v5e/v6e, ~48 MiB on v7x).
    xb = adj_x.dtype.itemsize
    ob = jnp.dtype(out_dtype).itemsize
    need = (2 * tm * in_dim * xb          # streamed x tiles (double-buffered)
            + 2 * tm * n_pad * ob         # output tiles (double-buffered)
            + w_bufs * in_dim * n_pad * cdt_bytes   # resident weight
            + w_bufs * n_pad * 4          # resident bias
            + tm * n_pad * 4)             # f32 intermediate headroom
    try:
        vmem_cap = pltpu.get_tpu_info().vmem_capacity_bytes
    except Exception:
        vmem_cap = 64 << 20               # assume the smallest (v7x per-TC)
    vmem_limit = int(min(int(vmem_cap * 3 // 4),
                         max(16 << 20, need + (4 << 20))))

    # TODO(synk): for very large in_dim/out_dim (resident W no longer fitting
    # VMEM, earlier on v7x), add K/N grid axes ("arbitrary" K with an f32 VMEM
    # accumulator); unnecessary at these sizes.
    out = pl.pallas_call(
        functools.partial(_gnn_kernel, compute_dtype=compute_dtype),
        out_shape=jax.ShapeDtypeStruct((M, n_pad), out_dtype),
        grid=(grid_m,),
        in_specs=[x_spec, w_spec, b_spec],
        out_specs=o_spec,
        compiler_params=pltpu.CompilerParams(
            dimension_semantics=("parallel",),
            vmem_limit_bytes=vmem_limit),
    )(adj_x, w, b)

    return out if n_pad == out_dim else out[:, :out_dim]


def gnn_layer(adj_x, weight, bias, *, out_dtype=None,
              compute_dtype=jnp.bfloat16, tile_m_max=1024):
    """Convenience wrapper: prepares params then applies (prefer calling
    prepare_gnn_params once per parameter set in real use)."""
    w, b = prepare_gnn_params(weight, bias, compute_dtype=compute_dtype)
    return gnn_layer_apply(adj_x, w, b, out_dim=weight.shape[0],
                           out_dtype=out_dtype, compute_dtype=compute_dtype,
                           tile_m_max=tile_m_max)


if __name__ == "__main__":
    key = jax.random.PRNGKey(0)
    k_x, k_w, k_b = jax.random.split(key, 3)

    num_nodes, in_dim, out_dim = 8, 32, 32

    # adj_x: aggregated node features (adj @ x applied upstream of this layer).
    adj_x = jax.random.normal(k_x, (num_nodes, in_dim), dtype=jnp.float32)

    # PyTorch nn.Linear-style init, kept in [out_dim, in_dim] layout.
    bound = 1.0 / (in_dim ** 0.5)
    weight = jax.random.uniform(k_w, (out_dim, in_dim), jnp.float32,
                                minval=-bound, maxval=bound)
    bias = jax.random.uniform(k_b, (out_dim,), jnp.float32,
                              minval=-bound, maxval=bound)

    # Prepare params once (hoisted out of the per-call path), then apply.
    w_p, b_p = prepare_gnn_params(weight, bias)
    out = gnn_layer_apply(adj_x, w_p, b_p, out_dim=out_dim)
    out = jax.block_until_ready(out)

    # f32 reference for the original nn.Linear + ReLU semantics; kernel uses
    # bf16 MXU inputs with f32 accumulation, so compare with bf16 tolerance.
    ref = jnp.maximum(adj_x @ weight.T + bias, 0.0)
    assert out.shape == (num_nodes, out_dim)
    max_err = float(jnp.max(jnp.abs(out - ref)))
    assert jnp.allclose(out, ref, atol=2e-2, rtol=2e-2), max_err

    print("KERNEL_OK")
</pallas_src>

<mosaic_0001>
module attributes {stable_mosaic.version = 11 : i64} {
  func.func @_gnn_kernel(%arg0: i32, %arg1: memref<8x32xf32, #tpu.memory_space<vmem>>, %arg2: memref<32x128xbf16, #tpu.memory_space<vmem>>, %arg3: memref<1x128xf32, #tpu.memory_space<vmem>>, %arg4: memref<8x128xf32, #tpu.memory_space<vmem>>) attributes {dimension_semantics = [#tpu.dimension_semantics<parallel>], iteration_bounds = array<i64: 1>, scalar_prefetch = 0 : i64, scratch_operands = 0 : i64, tpu.core_type = #tpu.core_type<tc>, window_params = [{transform_indices = @transform_0, window_bounds = array<i64: 8, 32>}, {pipeline_mode = #tpu.pipeline_mode<synchronous>, transform_indices = @transform_1, window_bounds = array<i64: 32, 128>}, {pipeline_mode = #tpu.pipeline_mode<synchronous>, transform_indices = @transform_2, window_bounds = array<i64: 1, 128>}, {transform_indices = @transform_3, window_bounds = array<i64: 8, 128>}]} {
    %c0 = arith.constant 0 : index
    %c0_0 = arith.constant 0 : index
    %0 = vector.load %arg1[%c0, %c0_0] : memref<8x32xf32, #tpu.memory_space<vmem>>, vector<8x32xf32>
    %1 = arith.truncf %0 : vector<8x32xf32> to vector<8x32xbf16>
    %c0_1 = arith.constant 0 : index
    %c0_2 = arith.constant 0 : index
    %2 = vector.load %arg2[%c0_1, %c0_2] : memref<32x128xbf16, #tpu.memory_space<vmem>>, vector<32x128xbf16>
    %cst = arith.constant dense<0.000000e+00> : vector<8x128xf32>
    %3 = tpu.matmul %1, %2, %cst {dimension_numbers = #tpu.dot_dimension_numbers<[1], [0], [0], [1], [0, 0, 1, 1], [], []>} : vector<8x32xbf16>, vector<32x128xbf16>, vector<8x128xf32> -> vector<8x128xf32>
    %c0_3 = arith.constant 0 : index
    %c0_4 = arith.constant 0 : index
    %4 = vector.load %arg3[%c0_3, %c0_4] : memref<1x128xf32, #tpu.memory_space<vmem>>, vector<1x128xf32>
    %5 = vector.broadcast %4 : vector<1x128xf32> to vector<8x128xf32>
    %6 = arith.addf %3, %5 : vector<8x128xf32>
    %cst_5 = arith.constant 0.000000e+00 : f32
    %7 = vector.broadcast %cst_5 : f32 to vector<8x128xf32>
    %8 = arith.maximumf %6, %7 : vector<8x128xf32>
    %c0_6 = arith.constant 0 : index
    %c0_7 = arith.constant 0 : index
    %9 = vector.load %arg4[%c0_6, %c0_7] : memref<8x128xf32, #tpu.memory_space<vmem>>, vector<8x128xf32>
    tpu.vector_store %arg4[%c0_6, %c0_7], %8 {strides = array<i32>} : memref<8x128xf32, #tpu.memory_space<vmem>>, vector<8x128xf32>,
    return
  }
  func.func @transform_0(%arg0: i32) -> (i32, i32) {
    %c0_i32 = arith.constant 0 : i32
    %c0_i32_0 = arith.constant 0 : i32
    return %arg0, %c0_i32 : i32, i32
  }
  func.func @transform_1(%arg0: i32) -> (i32, i32) {
    %c0_i32 = arith.constant 0 : i32
    %c0_i32_0 = arith.constant 0 : i32
    %c0_i32_1 = arith.constant 0 : i32
    return %c0_i32, %c0_i32_0 : i32, i32
  }
  func.func @transform_2(%arg0: i32) -> (i32, i32) {
    %c0_i32 = arith.constant 0 : i32
    %c0_i32_0 = arith.constant 0 : i32
    %c0_i32_1 = arith.constant 0 : i32
    return %c0_i32, %c0_i32_0 : i32, i32
  }
  func.func @transform_3(%arg0: i32) -> (i32, i32) {
    %c0_i32 = arith.constant 0 : i32
    %c0_i32_0 = arith.constant 0 : i32
    return %arg0, %c0_i32 : i32, i32
  }
}

</mosaic_0001>

<bundles_post_ra>
// kernel: tpu_custom_call.1
= control target key start
LH: loop header
LB: loop body
LE: loop exit
PB: predicated region body
PF: predicated region fallthrough
CT: control target
= control target key end

     0   :  { %8 = vsyncpa [#allocation3], 0  ;;  %s237_s0 = inlined_call_operand.hbm [shape: f32[8,32], index: 0, kind: input, shape index: {}]   ;;  %s238_s1 = inlined_call_operand.hbm [shape: bf16[32,128], index: 1, kind: input, shape index: {}]   ;;  %s239_s2 = inlined_call_operand.vmem [shape: f32[1,128], index: 2, kind: input, shape index: {}]   ;;  %s240_s3 = inlined_call_operand.hbm [shape: f32[8,128], index: 3, kind: output, shape index: {}]  }
   0x1   :  { %9 = vsyncpa [#allocation6], 0 }
   0x2   :  { %10 = vsyncpa [#allocation4], 0  ;;  %s16_s14 = sshll.u32 %s237_s0, 4  ;;  %s200_s15 = smov [#allocation2]   ;;  %s17_s14 = int_to_ptr.hbm [resolvable:$true] %s16_s14 }
   0x3   :  { %s18_s16 = sshll.u32 %s200_s15, 4  ;;  %s26_s19 = sshll.u32 %s238_s1, 4  ;;  %s19_s16 = int_to_ptr.vmem [resolvable:$true] %s18_s16  ;;  %s27_s19 = int_to_ptr.hbm [resolvable:$true] %s26_s19 }
   0x4   :  { %21 = dma.hbm_to_vmem [thread:$0]  %s17_s14, 128, %s19_s16, [#allocation3]  }
   0x5   :  { %s201_s20 = smov [#allocation5]   ;;  %s202_s22 = smov 64  }
   0x6   :  { %s28_s21 = sshll.u32 %s201_s20, 4  ;;  %s203_s23 = smov 4   ;;  %s29_s21 = int_to_ptr.vmem [resolvable:$true] %s28_s21 }
   0x7   :  { %34 = dma.hbm_to_vmem [thread:$0]  %s27_s19, 256, %s29_s21, [#allocation6], %s202_s22, %s202_s22, %s203_s23  }
   0x8   :  { %194 = dma.done.wait [#allocation3], 128  }
   0x9   :  { %195 = vsyncadd [#allocation3], 4294967168 }
   0xa   :  { %196 = dma.done.wait [#allocation6], 256  }
   0xb   :  { %197 = vsyncadd [#allocation6], 4294967040  ;;  %v115_v0 = vld [vmem:[#allocation5 + $0x8] sm:$0xff]  ;;  %v114_v1 = vld [vmem:[#allocation5] sm:$0xff]  ;;  %vm68_vm0 = vcmask 261120   ;;  %s204_s24 = smov [#allocation7]  }
   0xc   :  { %78 = vmatpush.bf16.msra.mxu0 %v115_v0  ;;  %v46_v2 = vld [vmem:[#allocation2] sm:$0xff]  ;;  %s92_s25 = sshll.u32 %s204_s24, 4  ;;  %s94_s28 = sshll.u32 %s240_s3, 4  ;;  %s93_s25 = int_to_ptr.vmem [resolvable:$true] %s92_s25  ;;  %s95_s28 = int_to_ptr.hbm [resolvable:$true] %s94_s28 }
   0xd   :  { %v47_v3 = vpack.c.bf16 %v46_v2, %v46_v2  ;;  %v121_v4 = vld [vmem:[%s239_s2] ss:$0 sm:$0xff] }
  0x10   :  { %79 = vmatpush.bf16.msra.mxu0 %v114_v1 }
  0x13   :  { %113 = vmatmul.msk.bf16.vlgmr.msra.gmra.mxu0 %vm68_vm0, %v47_v3 }
  0x90   :  { %v81_v5 = vpop.f32.mrf.mxu0 }
  0x91   :  { %v82_v6 = vadd.f32 %v121_v4, %v81_v5 }
  0x93   :  { %v85_v7 = vmax.f32 %v82_v6, 0.0 }
  0x95   :  { %86 = vst [vmem:[#allocation7] sm:$0xff] %v85_v7 }
  0x96   :  { %97 = dma.vmem_to_hbm [thread:$0]  %s93_s25, 128, %s95_s28, [#allocation4]  }
  0x98   :  { %v83_v8 = vpop.f32.mrf.mxu0 }
  0x99   :  { %198 = dma.done.wait [#allocation4], 128  }
  0x9a   :  { %199 = vsyncadd [#allocation4], 4294967168 }
  0x9b   :  { %102 = vsyncpa [#allocation3], 1 }
  0x9c   :  { %103 = vsyncpa [#allocation6], 1 }
  0x9d   :  { %104 = vsyncpa [#allocation4], 1 }

</bundles_post_ra>
